<compile_context>
chip_gen: v5e
topology: v5e:2x2
jax: 0.10.0
libtpu: 0.0.40
codegen_flags: <defaults>
</compile_context>

<pallas_src>
import functools

import numpy as np
import jax
import jax.numpy as jnp
from jax import lax
from jax.experimental import pallas as pl
from jax.experimental.pallas import tpu as pltpu

_LANE = 128


def _round_up(x, m):
    return ((x + m - 1) // m) * m


def _quantize_kernel(rei_ref, wcb_ref, idx_ref, *, codebook_num, num_embed):
    """One fused MXU matmul + per-codebook first-max argmax.

    rei_ref : (TR, 2F)    rotated spectrum [re | im] for TR rows
    wcb_ref : (2F, CN*M)  constant  [cmat@proj; smat@proj] @ normalize(cb)^T
    idx_ref : (CN, TR)    lane-dense nearest-codeword indices
    """
    # Single MXU matmul per tile: similarity against ALL codebooks at once.
    sim = jnp.dot(rei_ref[...], wcb_ref[...], preferred_element_type=jnp.float32)

    # Hoisted once per grid step (identical for every codebook).
    iota = lax.broadcasted_iota(jnp.int32, (sim.shape[0], num_embed), 1)
    big = jnp.iinfo(jnp.int32).max

    for c in range(codebook_num):                                  # small static loop
        sim_c = sim[:, c * num_embed:(c + 1) * num_embed]          # (TR, M)
        # First-maximal-index argmax (torch semantics) via max + masked min.
        m = jnp.max(sim_c, axis=-1, keepdims=True)
        idx = jnp.min(jnp.where(sim_c == m, iota, big), axis=-1)
        idx_ref[c, :] = idx.astype(jnp.int32)                      # lane-dense row


def prepare_quantize_params(projector, codebook, input_dim, *,
                            compute_dtype=jnp.float32):
    """Fold irFFT + projector + normalized codebook into ONE (2F, CN*M) constant.

    Do this ONCE per parameter set (frozen parameters), not per forward call.
    sim = [re | im] @ Wcb  equals  irfft(spectrum) @ projector @ normalize(cb)^T
    up to a positive per-row scale that does not change the argmax.
    """
    L = input_dim
    Fdim = L // 2 + 1
    CN, M, D = codebook.shape

    # irfft-as-matmul DFT matrices (host/trace time, numpy).
    k = np.arange(Fdim)[:, None].astype(np.float64)
    n = np.arange(L)[None, :].astype(np.float64)
    w = np.full((Fdim, 1), 2.0, dtype=np.float64)
    w[0, 0] = 1.0
    if L % 2 == 0:
        w[L // 2, 0] = 1.0
    theta = 2.0 * np.pi * k * n / L
    cmat = jnp.asarray(w * np.cos(theta) / L, dtype=jnp.float32)     # (F, L)
    smat = jnp.asarray(-w * np.sin(theta) / L, dtype=jnp.float32)    # (F, L)

    proj = projector.astype(jnp.float32)
    W = jnp.concatenate([cmat @ proj, smat @ proj], axis=0)          # (2F, D)

    cb = codebook.astype(jnp.float32)
    cb = cb / jnp.linalg.norm(cb, axis=-1, keepdims=True)            # frozen param
    cb_flat = cb.reshape(CN * M, D)

    Wcb = W @ cb_flat.T                                              # (2F, CN*M)
    return Wcb.astype(compute_dtype)


def quantize_forward(x, Wcb, codebook_num, num_embed, *, row_tile=None,
                     compute_dtype=jnp.float32):
    B, T, L = x.shape
    Fdim = L // 2 + 1
    CN, M = codebook_num, num_embed
    R = B * T
    F2 = 2 * Fdim
    assert Wcb.shape == (F2, CN * M), Wcb.shape

    # ---- spectral glue ----
    # TODO(synk): torch.fft.rfft has no Pallas primitive; the rfft + per-row
    # phase rotation stay as fused XLA elementwise work (the irfft, projection
    # and codebook matmuls are all folded into the Wcb constant).  Moving the
    # rotation in-kernel would need in-kernel atan2/sin/cos lowering.
    xf = jnp.fft.rfft(x.astype(jnp.float32), axis=-1)                # (B, T, F)
    xr = jnp.real(xf)
    xi = jnp.imag(xf)
    # adjusted spectrum = xf * exp(-i*k*phi1), phi1 = angle(xf[..., 1])
    phi1 = jnp.arctan2(xi[..., 1:2], xr[..., 1:2])                   # (B, T, 1)
    ang = phi1 * jnp.arange(Fdim, dtype=jnp.float32)                 # (B, T, F)
    ca, sa = jnp.cos(ang), jnp.sin(ang)
    re = xr * ca + xi * sa
    im = xi * ca - xr * sa
    rei = jnp.concatenate([re, im], axis=-1).reshape(R, F2)          # (R, 2F)
    rei = rei.astype(compute_dtype)

    # ---- tiling: VMEM-budget row tile, >= 2 grid steps ----
    in_itemsize = jnp.dtype(compute_dtype).itemsize
    if row_tile is None:
        # Stay well under v5e's 16 MiB scoped-VMEM default (and v7x's 64 MiB
        # physical) without touching vmem_limit_bytes.
        budget = 8 * 1024 * 1024
        bytes_per_row = (2 * _round_up(F2, _LANE) * in_itemsize  # double-buffered rei
                         + CN * M * 4                            # sim tile (f32)
                         + 2 * CN * 4)                           # double-buffered idx
        TR = max(_LANE, min(4096, (budget // bytes_per_row) // _LANE * _LANE))
        # At least two grid steps so "parallel" can use both v7x TensorCores.
        TR = min(TR, max(_LANE, _round_up(pl.cdiv(R, 2), _LANE)))
    else:
        TR = row_tile
    assert TR % _LANE == 0, "row tile must be a multiple of 128"
    steps = max(2, pl.cdiv(R, TR))
    R_pad = steps * TR
    if R_pad != R:
        # Zero rows -> zero similarities -> index 0; sliced off below.
        rei = jnp.pad(rei, ((0, R_pad - R), (0, 0)))

    kernel = functools.partial(_quantize_kernel, codebook_num=CN, num_embed=M)
    cost = pl.CostEstimate(
        flops=2 * R_pad * F2 * CN * M,
        transcendentals=0,
        bytes_accessed=(R_pad * F2 * in_itemsize        # rei
                        + F2 * CN * M * in_itemsize     # Wcb constant
                        + CN * R_pad * 4))              # indices out

    idx_cr = pl.pallas_call(
        kernel,
        out_shape=jax.ShapeDtypeStruct((CN, R_pad), jnp.int32),
        grid_spec=pltpu.PrefetchScalarGridSpec(
            num_scalar_prefetch=0,
            grid=(steps,),
            in_specs=[
                pl.BlockSpec((TR, F2), lambda i: (i, 0)),        # [re | im] rows
                # Grid-invariant constant; tiny footprint so default
                # double-buffering is kept (pipeline_mode=pl.Buffered(1) would
                # shave one extra VMEM copy if CN*M grows large).
                pl.BlockSpec((F2, CN * M), lambda i: (0, 0)),
            ],
            out_specs=pl.BlockSpec((CN, TR), lambda i: (0, i)),  # lane-dense
        ),
        compiler_params=pltpu.CompilerParams(dimension_semantics=("parallel",)),
        cost_estimate=cost,
    )(rei, Wcb)

    # (CN, R_pad) -> (B, T, 1, CN), matching the torch module's output shape.
    return jnp.transpose(idx_cr[:, :R], (1, 0)).reshape(B, T, 1, CN)


def _reference(x, projector, codebook):
    """Pure-JAX mirror of the torch forward, for verification."""
    xf = jnp.fft.rfft(x, axis=-1)
    mag = jnp.abs(xf)
    ph = jnp.angle(xf)
    lin = jnp.arange(ph.shape[-1], dtype=ph.dtype)
    ph = ph - ph[:, :, 1:2] * lin
    xrot = mag * jnp.exp(1j * ph)
    xrec = jnp.fft.irfft(xrot, n=x.shape[-1], axis=-1)[:, :, None, :]
    feat = xrec @ projector
    feat = feat / jnp.linalg.norm(feat, axis=-1, keepdims=True)
    cb = codebook / jnp.linalg.norm(codebook, axis=-1, keepdims=True)
    sim = jnp.einsum('btnd,cmd->btncm', feat, cb)
    return jnp.argmax(sim, axis=-1).astype(jnp.int32)


if __name__ == "__main__":
    B, T = 2, 128
    input_dim, vq_dim = 32, 64
    num_embed, codebook_num = 128, 2

    key = jax.random.PRNGKey(0)
    kx, kp, kc = jax.random.split(key, 3)
    x = jax.random.normal(kx, (B, T, input_dim), dtype=jnp.float32)
    # projector: xavier_normal_(empty(input_dim, vq_dim)), frozen parameter
    xavier_std = float(np.sqrt(2.0 / (input_dim + vq_dim)))
    projector = xavier_std * jax.random.normal(kp, (input_dim, vq_dim), dtype=jnp.float32)
    # codebook: normal_(empty(codebook_num, num_embed, vq_dim)), frozen parameter
    codebook = jax.random.normal(kc, (codebook_num, num_embed, vq_dim), dtype=jnp.float32)

    # One-time constant fold of the frozen parameters (irDFT @ proj @ cb^T).
    Wcb = prepare_quantize_params(projector, codebook, input_dim)

    idx = quantize_forward(x, Wcb, codebook_num, num_embed)   # TR=128, grid=(2,)
    idx = jax.block_until_ready(idx)

    ref = _reference(x, projector, codebook)
    assert idx.shape == (B, T, 1, codebook_num), idx.shape
    match = float(jnp.mean((idx == ref).astype(jnp.float32)))
    assert match >= 0.99, f"argmax mismatch vs reference: match fraction {match}"

    print("KERNEL_OK")
</pallas_src>

<mosaic_0001>
module attributes {stable_mosaic.version = 11 : i64} {
  func.func @_quantize_kernel(%arg0: i32, %arg1: memref<128x34xf32, #tpu.memory_space<vmem>>, %arg2: memref<34x256xf32, #tpu.memory_space<vmem>>, %arg3: memref<2x128xi32, #tpu.memory_space<vmem>>) attributes {dimension_semantics = [#tpu.dimension_semantics<parallel>], iteration_bounds = array<i64: 2>, scalar_prefetch = 0 : i64, scratch_operands = 0 : i64, tpu.core_type = #tpu.core_type<tc>, window_params = [{transform_indices = @transform_0, window_bounds = array<i64: 128, 34>}, {pipeline_mode = #tpu.pipeline_mode<synchronous>, transform_indices = @transform_1, window_bounds = array<i64: 34, 256>}, {transform_indices = @transform_2, window_bounds = array<i64: 2, 128>}]} {
    %c0 = arith.constant 0 : index
    %c0_0 = arith.constant 0 : index
    %0 = vector.load %arg1[%c0, %c0_0] : memref<128x34xf32, #tpu.memory_space<vmem>>, vector<128x34xf32>
    %c0_1 = arith.constant 0 : index
    %c0_2 = arith.constant 0 : index
    %1 = vector.load %arg2[%c0_1, %c0_2] : memref<34x256xf32, #tpu.memory_space<vmem>>, vector<34x256xf32>
    %cst = arith.constant dense<0.000000e+00> : vector<128x256xf32>
    %2 = tpu.matmul %0, %1, %cst {dimension_numbers = #tpu.dot_dimension_numbers<[1], [0], [0], [1], [0, 0, 1, 1], [], []>} : vector<128x34xf32>, vector<34x256xf32>, vector<128x256xf32> -> vector<128x256xf32>
    %3 = tpu.iota {dimensions = array<i32: 1>} : vector<128x128xi32>
    %4 = vector.extract_strided_slice %2 {offsets = [0, 0], sizes = [128, 128], strides = [1, 1]} : vector<128x256xf32> to vector<128x128xf32>
    %cst_3 = arith.constant dense<0xFF800000> : vector<128xf32>
    %5 = vector.multi_reduction <maximumf>, %4, %cst_3 [1] : vector<128x128xf32> to vector<128xf32>
    %6 = vector.shape_cast %5 : vector<128xf32> to vector<128x1xf32>
    %7 = vector.broadcast %6 : vector<128x1xf32> to vector<128x128xf32>
    %8 = arith.cmpf oeq, %4, %7 : vector<128x128xf32>
    %c2147483647_i32 = arith.constant 2147483647 : i32
    %9 = vector.broadcast %c2147483647_i32 : i32 to vector<128x128xi32>
    %10 = arith.select %8, %3, %9 : vector<128x128xi1>, vector<128x128xi32>
    %cst_4 = arith.constant dense<2147483647> : vector<128xi32>
    %11 = vector.multi_reduction <minsi>, %10, %cst_4 [1] : vector<128x128xi32> to vector<128xi32>
    %c0_5 = arith.constant 0 : index
    %c0_6 = arith.constant 0 : index
    %12 = vector.load %arg3[%c0_5, %c0_6] : memref<2x128xi32, #tpu.memory_space<vmem>>, vector<1x128xi32>
    %13 = vector.shape_cast %12 : vector<1x128xi32> to vector<128xi32>
    %14 = vector.shape_cast %11 : vector<128xi32> to vector<1x128xi32>
    tpu.vector_store %arg3[%c0_5, %c0_6], %14 {strides = array<i32>} : memref<2x128xi32, #tpu.memory_space<vmem>>, vector<1x128xi32>,
    %15 = vector.extract_strided_slice %2 {offsets = [0, 128], sizes = [128, 128], strides = [1, 1]} : vector<128x256xf32> to vector<128x128xf32>
    %cst_7 = arith.constant dense<0xFF800000> : vector<128xf32>
    %16 = vector.multi_reduction <maximumf>, %15, %cst_7 [1] : vector<128x128xf32> to vector<128xf32>
    %17 = vector.shape_cast %16 : vector<128xf32> to vector<128x1xf32>
    %18 = vector.broadcast %17 : vector<128x1xf32> to vector<128x128xf32>
    %19 = arith.cmpf oeq, %15, %18 : vector<128x128xf32>
    %c2147483647_i32_8 = arith.constant 2147483647 : i32
    %20 = vector.broadcast %c2147483647_i32_8 : i32 to vector<128x128xi32>
    %21 = arith.select %19, %3, %20 : vector<128x128xi1>, vector<128x128xi32>
    %cst_9 = arith.constant dense<2147483647> : vector<128xi32>
    %22 = vector.multi_reduction <minsi>, %21, %cst_9 [1] : vector<128x128xi32> to vector<128xi32>
    %c1 = arith.constant 1 : index
    %c0_10 = arith.constant 0 : index
    %23 = vector.load %arg3[%c1, %c0_10] : memref<2x128xi32, #tpu.memory_space<vmem>>, vector<1x128xi32>
    %24 = vector.shape_cast %23 : vector<1x128xi32> to vector<128xi32>
    %25 = vector.shape_cast %22 : vector<128xi32> to vector<1x128xi32>
    tpu.vector_store %arg3[%c1, %c0_10], %25 {strides = array<i32>} : memref<2x128xi32, #tpu.memory_space<vmem>>, vector<1x128xi32>,
    return
  }
  func.func @transform_0(%arg0: i32) -> (i32, i32) {
    %c0_i32 = arith.constant 0 : i32
    %c0_i32_0 = arith.constant 0 : i32
    return %arg0, %c0_i32 : i32, i32
  }
  func.func @transform_1(%arg0: i32) -> (i32, i32) {
    %c0_i32 = arith.constant 0 : i32
    %c0_i32_0 = arith.constant 0 : i32
    %c0_i32_1 = arith.constant 0 : i32
    return %c0_i32, %c0_i32_0 : i32, i32
  }
  func.func @transform_2(%arg0: i32) -> (i32, i32) {
    %c0_i32 = arith.constant 0 : i32
    %c0_i32_0 = arith.constant 0 : i32
    return %c0_i32, %arg0 : i32, i32
  }
}

</mosaic_0001>

<bundles_post_ra>
// kernel: tpu_custom_call.1
= control target key start
LH: loop header
LB: loop body
LE: loop exit
PB: predicated region body
PF: predicated region fallthrough
CT: control target
= control target key end

     0   :  { %7 = vsyncpa [#allocation3], 0  ;;  %s2165_s0 = inlined_call_operand.vmem [shape: f32[256,34], index: 0, kind: input, shape index: {}]   ;;  %s2166_s1 = inlined_call_operand.vmem [shape: f32[34,256], index: 1, kind: input, shape index: {}]   ;;  %s2167_s2 = inlined_call_operand.hbm [shape: s32[2,256], index: 2, kind: output, shape index: {}]  }
   0x1   :  { %9 = vsyncpa [#allocation3 + $0x1], 0  ;;  %s1276_s9 = smov 0   ;;  %s1278_s10 = smov 0  }
   0x2   :  { %s1280_s11 = smov 0   ;;  %s1282_s12 = smov 0  }
   0x3 LB: > { %s1297_s13 = sadd.s32 4294967295, %s1259_s12   ;;  %s1103_s14 = sadd.s32 4294967294, %s1259_s12   ;;  %s1259_s12 = sphi %s1282_s12, %s2207_s12   ;;  %s1255_s11 = sphi %s1280_s11, %s2206_s11   ;;  %s1251_s10 = sphi %s1278_s10, %s2205_s10   ;;  %s1247_s9 = sphi %s1276_s9, %s2204_s9  }
   0x4   : > { %s1301_s15 = sadd.s32 1, %s1259_s12   ;;  %s69_s16 = sadd.s32 1, %s1255_s11 }
   0x5   : > { %s66_s17 = ssub.s32 %s1259_s12, %s1301_s15  ;;  %p79_p0 = scmp.ne.s32.totalorder %s1255_s11, %s1251_s10 }
   0x6   : > { %p67_p1 = scmp.eq.s32.totalorder %s66_s17, 0  ;;  %p80_p2 = scmp.eq.s32.totalorder %s1297_s13, 1 }
   0x7   : > { %p85_p3 = scmp.ne.s32.totalorder %s1251_s10, %s1247_s9  ;;  %p86_p4 = scmp.eq.s32.totalorder %s1103_s14, 1 }
   0x8   : > { %s1312_s18 = scalar_select %p67_p1, %s1255_s11, %s69_s16  }
   0x9   : > { %p1314_p5 = por %p80_p2, %p79_p0  ;;  %p1318_p6 = por %p86_p4, %p85_p3 }
   0xa   : > { %p1106_p7 = scmp.ge.s32.totalorder %s1259_s12, 1  ;;  %p116_p8 = scmp.lt.s32.totalorder %s1259_s12, 3 }
   0xc   : > { %p117_p9 = pnand %p1106_p7, %p116_p8 }
   0xe   : > { %120 = sbr.rel (%p117_p9) target bundleno = 618 (0x26a), region = 28 }
  0x13   : > { %v168_v0 = vld [vmem:[%s2166_s1 + $0x40] sm:$0x3]  ;;  %vm219_vm0 = vcmask 1041408   ;;  %v169_v1 = vld [vmem:[%s2166_s1 + $0x48] sm:$0x3]  ;;  %v166_v2 = vld [vmem:[%s2166_s1 + $0x30] sm:$0xff]  ;;  %v356_v58 = vlaneseq }
  0x14   : > { %1110 = vmatpush.msk.msra.mxu0 %vm219_vm0, %v168_v0  ;;  %1148 = vmatpush.msk.msra.mxu2 %vm219_vm0, %v168_v0  ;;  %v167_v3 = vld [vmem:[%s2166_s1 + $0x38] sm:$0xff]  ;;  %s1108_s29 = sshll.u32 %s1297_s13, 4  ;;  %v164_v4 = vld [vmem:[%s2166_s1 + $0x20] sm:$0xff]  ;;  %v165_v5 = vld [vmem:[%s2166_s1 + $0x28] sm:$0xff]  ;;  %vm170_vm1 = vcmask 277504   ;;  %s135_s27 = sand.u32 1, %s1251_s10  }
  0x15   : > { %1127 = vmatpush.msk.msra.mxu1 %vm219_vm0, %v169_v1  ;;  %1153 = vmatpush.msk.msra.mxu3 %vm219_vm0, %v169_v1  ;;  %p139_p10 = scmp.lt.s32.totalorder %s1108_s29, 31  ;;  %v162_v6 = vld [vmem:[%s2166_s1 + $0x10] sm:$0xff]  ;;  %v163_v7 = vld [vmem:[%s2166_s1 + $0x18] sm:$0xff]  ;;  %v160_v8 = vld [vmem:[%s2166_s1] sm:$0xff]  ;;  %v1504_v59 = vand.u32 127, %v356_v58  ;;  %s1107_s28 = sshll.u32 %s135_s27, 1 }
  0x16   : > { %238 = vmatpush.msra.mxu0 %v166_v2  ;;  %1149 = vmatpush.msra.mxu2 %v166_v2  ;;  %v161_v9 = vld [vmem:[%s2166_s1 + $0x8] sm:$0xff]  ;;  %s137_s4 = scalar_lea.vmem [#allocation2], %s1107_s28  ;;  %s1029_s7 = scalar_lea.sflag [#allocation3], %s135_s27 }
  0x17   : > { %303 = vmatpush.msra.mxu1 %v167_v3  ;;  %1154 = vmatpush.msra.mxu3 %v167_v3  ;;  %s2209_s29 = smov (!%p139_p10, %s1108_s29), 31  ;;  %2182 = vst [vmem:[#allocation5_spill] sm:$0xff] %v1504_v59  ;;  %s1041_s5 = sshll.u32 %s137_s4, 4  ;;  %s1042_s5 = int_to_ptr.vmem [resolvable:$true] %s1041_s5 }
  0x18   : > { %239 = vmatpush.msra.mxu0 %v164_v4  ;;  %1150 = vmatpush.msra.mxu2 %v164_v4  ;;  %s1109_s21 = sshll.u32 %s2209_s29, 3  ;;  %s1145_s29 = sshll.u32 %s1297_s13, 1 }
  0x19   : > { %304 = vmatpush.msra.mxu1 %v165_v5  ;;  %1155 = vmatpush.msra.mxu3 %v165_v5  ;;  %s1358_s26 = scalar_lea.vmem %s2165_s0, %s1109_s21  ;;  %s1039_s3 = scalar_lea.hbm %s2167_s2, %s1145_s29 }
  0x1a   : > { %240 = vmatpush.msra.mxu0 %v162_v6  ;;  %1151 = vmatpush.msra.mxu2 %v162_v6  ;;  %v144_v10 = vld [vmem:[%s1358_s26] sm:$0xff]  ;;  %v153_v12 = vld [vmem:[%s1358_s26 + $0x48] sm:$0xff]  ;;  %v154_v14 = vld [vmem:[%s1358_s26 + $0x50] sm:$0xff]  ;;  %s1043_s6 = sshll.u32 %s1039_s3, 4  ;;  %s1217_s21 = scalar_lea.hbm %s2167_s2, 4  ;;  %s1044_s6 = int_to_ptr.hbm [resolvable:$true] %s1043_s6 }
  0x1b   : > { %305 = vmatpush.msra.mxu1 %v163_v7  ;;  %1156 = vmatpush.msra.mxu3 %v163_v7  ;;  %v152_v11 = vld [vmem:[%s1358_s26 + $0x40] sm:$0xff]  ;;  %v145_v13 = vld [vmem:[%s1358_s26 + $0x8] sm:$0xff]  ;;  %v146_v15 = vld [vmem:[%s1358_s26 + $0x10] sm:$0xff]  ;;  %s1211_s8 = sshra.s32 %s1044_s6, 4  ;;  %s1212_s8 = int_to_ptr.hbm [resolvable:$true] %s1211_s8 }
  0x1c   : > { %241 = vmatpush.msra.mxu0 %v160_v8  ;;  %1152 = vmatpush.msra.mxu2 %v160_v8  ;;  %v155_v16 = vld [vmem:[%s1358_s26 + $0x58] sm:$0xff]  ;;  %v148_v18 = vld [vmem:[%s1358_s26 + $0x20] sm:$0xff]  ;;  %v149_v20 = vld [vmem:[%s1358_s26 + $0x28] sm:$0xff]  ;;  %s1213_s14 = scalar_lea.hbm %s1212_s8, 2  ;;  %p1218_p0 = scmp.lt.s32.totalorder %s1212_s8, %s2167_s2 }
  0x1d   : > { %306 = vmatpush.msra.mxu1 %v161_v9  ;;  %1157 = vmatpush.msra.mxu3 %v161_v9  ;;  %v147_v17 = vld [vmem:[%s1358_s26 + $0x18] sm:$0xff]  ;;  %v156_v19 = vld [vmem:[%s1358_s26 + $0x60] sm:$0xff]  ;;  %v157_v21 = vld [vmem:[%s1358_s26 + $0x68] sm:$0xff]  ;;  %p1214_p11 = scmp.ne.s32.totalorder %s1212_s8, %s1213_s14  ;;  %p1219_p1 = scmp.lt.s32.totalorder %s1217_s21, %s1213_s14 }
  0x1e   : > { %1111 = vmatmul.msk.f32.vlgmr.msra.gmra.mxu0 %vm170_vm1, %v144_v10  ;;  %1119 = vmatmul.msk.f32.vlgmr.msra.gmra.mxu2 %vm170_vm1, %v152_v11  ;;  %v150_v22 = vld [vmem:[%s1358_s26 + $0x30] sm:$0xff]  ;;  %v159_v24 = vld [vmem:[%s1358_s26 + $0x78] sm:$0xff] }
  0x1f   : > { %1128 = vmatmul.msk.f32.vlgmr.msra.gmra.mxu1 %vm170_vm1, %v144_v10  ;;  %1136 = vmatmul.msk.f32.vlgmr.msra.gmra.mxu3 %vm170_vm1, %v152_v11  ;;  %v158_v23 = vld [vmem:[%s1358_s26 + $0x70] sm:$0xff]  ;;  %v151_v25 = vld [vmem:[%s1358_s26 + $0x38] sm:$0xff]  ;;  %p1215_p12 = pnand %p1214_p11, %p1314_p5  ;;  %p1220_p2 = por %p1219_p1, %p1218_p0 }
  0x21   : > { %p1216_p13 = pneg %p1215_p12 }
  0x23   : > { %p1221_p3 = pnand %p1220_p2, %p1216_p13 }
  0x26   : > { %1120 = vmatmul.msk.f32.gmra.mxu2 %vm170_vm1, %v153_v12  ;;  %1112 = vmatmul.msk.f32.gmra.mxu0 %vm170_vm1, %v145_v13 }
  0x27   : > { %1137 = vmatmul.msk.f32.gmra.mxu3 %vm170_vm1, %v153_v12  ;;  %1129 = vmatmul.msk.f32.gmra.mxu1 %vm170_vm1, %v145_v13 }
  0x2e   : > { %1121 = vmatmul.msk.f32.gmra.mxu2 %vm170_vm1, %v154_v14  ;;  %1113 = vmatmul.msk.f32.gmra.mxu0 %vm170_vm1, %v146_v15 }
  0x2f   : > { %1138 = vmatmul.msk.f32.gmra.mxu3 %vm170_vm1, %v154_v14  ;;  %1130 = vmatmul.msk.f32.gmra.mxu1 %vm170_vm1, %v146_v15 }
  0x36   : > { %1122 = vmatmul.msk.f32.gmra.mxu2 %vm170_vm1, %v155_v16  ;;  %1114 = vmatmul.msk.f32.gmra.mxu0 %vm170_vm1, %v147_v17 }
  0x37   : > { %1139 = vmatmul.msk.f32.gmra.mxu3 %vm170_vm1, %v155_v16  ;;  %1131 = vmatmul.msk.f32.gmra.mxu1 %vm170_vm1, %v147_v17 }
  0x3e   : > { %1115 = vmatmul.msk.f32.gmra.mxu0 %vm170_vm1, %v148_v18  ;;  %1123 = vmatmul.msk.f32.gmra.mxu2 %vm170_vm1, %v156_v19 }
  0x3f   : > { %1132 = vmatmul.msk.f32.gmra.mxu1 %vm170_vm1, %v148_v18  ;;  %1140 = vmatmul.msk.f32.gmra.mxu3 %vm170_vm1, %v156_v19 }
  0x46   : > { %1116 = vmatmul.msk.f32.gmra.mxu0 %vm170_vm1, %v149_v20  ;;  %1124 = vmatmul.msk.f32.gmra.mxu2 %vm170_vm1, %v157_v21 }
  0x47   : > { %1133 = vmatmul.msk.f32.gmra.mxu1 %vm170_vm1, %v149_v20  ;;  %1141 = vmatmul.msk.f32.gmra.mxu3 %vm170_vm1, %v157_v21 }
  0x4e   : > { %1117 = vmatmul.msk.f32.gmra.mxu0 %vm170_vm1, %v150_v22  ;;  %1125 = vmatmul.msk.f32.gmra.mxu2 %vm170_vm1, %v158_v23 }
  0x4f   : > { %1142 = vmatmul.msk.f32.gmra.mxu3 %vm170_vm1, %v158_v23  ;;  %1134 = vmatmul.msk.f32.gmra.mxu1 %vm170_vm1, %v150_v22 }
  0x56   : > { %1126 = vmatmul.msk.f32.gmra.mxu2 %vm170_vm1, %v159_v24  ;;  %1118 = vmatmul.msk.f32.gmra.mxu0 %vm170_vm1, %v151_v25 }
  0x57   : > { %1135 = vmatmul.msk.f32.gmra.mxu1 %vm170_vm1, %v151_v25  ;;  %1143 = vmatmul.msk.f32.gmra.mxu3 %vm170_vm1, %v159_v24 }
  0x9b   : > { %v1408_v26 = vpop.f32.mrf.mxu0 }
  0x9c   : > { %v1410_v27 = vpop.f32.mrf.mxu1  ;;  %358 = vmax.xlane.f32.xlu0 %v1408_v26 }
  0x9d   : > { %708 = vmax.xlane.f32.xlu1 %v1410_v27 }
  0xa1   : > { %v1414_v28 = vpop.f32.mrf.mxu2 }
  0xa2   : > { %v1416_v29 = vpop.f32.mrf.mxu3  ;;  %374 = vmax.xlane.f32.xlu2 %v1414_v28 }
  0xa3   : > { %v1419_v30 = vpop.f32.mrf.mxu0 }
  0xa4   : > { %724 = vmax.xlane.f32.xlu0 %v1416_v29  ;;  %v1422_v31 = vpop.f32.mrf.mxu1 }
  0xa9   : > { %v1424_v32 = vpop.f32.mrf.mxu2 }
  0xaa   : > { %v1426_v33 = vpop.f32.mrf.mxu3  ;;  %710 = vmax.xlane.f32.xlu2 %v1422_v31 }
  0xab   : > { %726 = vmax.xlane.f32.xlu1 %v1426_v33  ;;  %v1431_v34 = vpop.f32.mrf.mxu0 }
  0xac   : > { %360 = vmax.xlane.f32.xlu0 %v1419_v30  ;;  %v1440_v37 = vpop.f32.mrf.mxu1 }
  0xb1   : > { %v1433_v35 = vpop.f32.mrf.mxu2 }
  0xb2   : > { %v1435_v36 = vpop.f32.mrf.mxu3 }
  0xb3   : > { %728 = vmax.xlane.f32.xlu2 %v1435_v36  ;;  %362 = vmax.xlane.f32.xlu1 %v1431_v34  ;;  %v1442_v38 = vpop.f32.mrf.mxu0 }
  0xb4   : > { %376 = vmax.xlane.f32.xlu0 %v1424_v32  ;;  %v1449_v40 = vpop.f32.mrf.mxu1 }
  0xb9   : > { %v1444_v39 = vpop.f32.mrf.mxu2 }
  0xba   : > { %v1453_v42 = vpop.f32.mrf.mxu3 }
  0xbb   : > { %380 = vmax.xlane.f32.xlu2 %v1444_v39  ;;  %378 = vmax.xlane.f32.xlu1 %v1433_v35  ;;  %v1451_v41 = vpop.f32.mrf.mxu0 }
  0xbc   : > { %712 = vmax.xlane.f32.xlu0 %v1440_v37  ;;  %v1458_v43 = vpop.f32.mrf.mxu1 }
  0xc1   : > { %v1460_v44 = vpop.f32.mrf.mxu2 }
  0xc2   : > { %v1465_v45 = vpop.f32.mrf.mxu3 }
  0xc3   : > { %364 = vmax.xlane.f32.xlu1 %v1442_v38  ;;  %366 = vmax.xlane.f32.xlu2 %v1451_v41  ;;  %v1467_v46 = vpop.f32.mrf.mxu0 }
  0xc4   : > { %730 = vmax.xlane.f32.xlu0 %v1453_v42  ;;  %v1469_v47 = vpop.f32.mrf.mxu1 }
  0xc9   : > { %v1474_v48 = vpop.f32.mrf.mxu2 }
  0xca   : > { %v1476_v49 = vpop.f32.mrf.mxu3 }
  0xcb   : > { %714 = vmax.xlane.f32.xlu1 %v1449_v40  ;;  %716 = vmax.xlane.f32.xlu2 %v1458_v43  ;;  %v1478_v50 = vpop.f32.mrf.mxu0 }
  0xcc   : > { %382 = vmax.xlane.f32.xlu0 %v1460_v44  ;;  %v1483_v51 = vpop.f32.mrf.mxu1 }
  0xd1   : > { %v1485_v52 = vpop.f32.mrf.mxu2 }
  0xd2   : > { %v1487_v53 = vpop.f32.mrf.mxu3 }
  0xd3   : > { %732 = vmax.xlane.f32.xlu1 %v1465_v45  ;;  %368 = vmax.xlane.f32.xlu2 %v1467_v46  ;;  %v1492_v54 = vpop.f32.mrf.mxu0 }
  0xd4   : > { %718 = vmax.xlane.f32.xlu0 %v1469_v47  ;;  %v1494_v55 = vpop.f32.mrf.mxu1 }
  0xd9   : > { %v1496_v56 = vpop.f32.mrf.mxu2 }
  0xda   : > { %v1501_v57 = vpop.f32.mrf.mxu3 }
  0xdb   : > { %384 = vmax.xlane.f32.xlu1 %v1474_v48  ;;  %734 = vmax.xlane.f32.xlu2 %v1476_v49 }
  0xdc   : > { %370 = vmax.xlane.f32.xlu0 %v1478_v50 }
  0xe3   : > { %720 = vmax.xlane.f32.xlu1 %v1483_v51  ;;  %386 = vmax.xlane.f32.xlu2 %v1485_v52 }
  0xe4   : > { %736 = vmax.xlane.f32.xlu0 %v1487_v53 }
  0xeb   : > { %722 = vmax.xlane.f32.xlu2 %v1494_v55  ;;  %372 = vmax.xlane.f32.xlu1 %v1492_v54 }
  0xec   : > { %388 = vmax.xlane.f32.xlu0 %v1496_v56 }
  0xf3   : > { %738 = vmax.xlane.f32.xlu1 %v1501_v57 }
 0x10f   : > { %v359_v60 = vpop.xlane.xlu0 %358 }
 0x110   : > { %v709_v61 = vpop.xlane.xlu1 %708  ;;  %vm390_vm2 = vcmp.eq.f32.partialorder %v1408_v26, %v359_v60 }
 0x111   : > { %vm740_vm3 = vcmp.eq.f32.partialorder %v1410_v27, %v709_v61  ;;  %v1509_v62 = vsel %vm390_vm2, %v1504_v59, 2147483647 }
 0x112   : > { %v1512_v63 = vsel %vm740_vm3, %v1504_v59, 2147483647  ;;  %v423_v0 = vshra.s32 %v1509_v62, 16 }
 0x113   : > { %v773_v1 = vshra.s32 %v1512_v63, 16 }
 0x114   : > { %v1516_v2 = vcvt.s32.f32 %v423_v0 }
 0x115   : > { %v375_v3 = vpop.xlane.xlu2 %374  ;;  %v1518_v4 = vcvt.s32.f32 %v773_v1 }
 0x116   : > { %vm398_vm4 = vcmp.eq.f32.partialorder %v1414_v28, %v375_v3  ;;  %426 = vmin.xlane.f32.xlu1 %v1516_v2 }
 0x117   : > { %v1523_v5 = vsel %vm398_vm4, %v1504_v59, 2147483647  ;;  %776 = vmin.xlane.f32.xlu2 %v1518_v4  ;;  %v725_v6 = vpop.xlane.xlu0 %724 }
 0x118   : > { %vm748_vm5 = vcmp.eq.f32.partialorder %v1416_v29, %v725_v6  ;;  %v535_v8 = vshra.s32 %v1523_v5, 16 }
 0x119   : > { %v1528_v7 = vsel %vm748_vm5, %v1504_v59, 2147483647 }
 0x11a   : > { %v885_v9 = vshra.s32 %v1528_v7, 16  ;;  %v1534_v12 = vcvt.s32.f32 %v535_v8 }
 0x11c   : > { %v1532_v10 = vcvt.s32.f32 %v885_v9 }
 0x11d   : > { %v711_v11 = vpop.xlane.xlu2 %710 }
 0x11e   : > { %v727_v13 = vpop.xlane.xlu1 %726  ;;  %888 = vmin.xlane.f32.xlu1 %v1532_v10  ;;  %vm741_vm8 = vcmp.eq.f32.partialorder %v1422_v31, %v711_v11 }
 0x11f   : > { %vm749_vm6 = vcmp.eq.f32.partialorder %v1426_v33, %v727_v13  ;;  %538 = vmin.xlane.f32.xlu2 %v1534_v12  ;;  %v361_v14 = vpop.xlane.xlu0 %360  ;;  %v1552_v20 = vsel %vm741_vm8, %v1504_v59, 2147483647 }
 0x120   : > { %v1540_v15 = vsel %vm749_vm6, %v1504_v59, 2147483647  ;;  %vm391_vm7 = vcmp.eq.f32.partialorder %v1419_v30, %v361_v14  ;;  %v787_v26 = vshra.s32 %v1552_v20, 16 }
 0x121   : > { %v1544_v16 = vsel %vm391_vm7, %v1504_v59, 2147483647  ;;  %v899_v17 = vshra.s32 %v1540_v15, 16 }
 0x122   : > { %v437_v18 = vshra.s32 %v1544_v16, 16  ;;  %v1569_v30 = vcvt.s32.f32 %v787_v26 }
 0x123   : > { %v1554_v21 = vcvt.s32.f32 %v899_v17 }
 0x124   : > { %v1549_v19 = vcvt.s32.f32 %v437_v18 }
 0x126   : > { %v729_v22 = vpop.xlane.xlu2 %728  ;;  %v363_v23 = vpop.xlane.xlu1 %362  ;;  %440 = vmin.xlane.f32.xlu0 %v1549_v19 }
 0x127   : > { %vm392_vm9 = vcmp.eq.f32.partialorder %v1431_v34, %v363_v23  ;;  %902 = vmin.xlane.f32.xlu2 %v1554_v21  ;;  %v377_v24 = vpop.xlane.xlu0 %376  ;;  %vm750_vm13 = vcmp.eq.f32.partialorder %v1435_v36, %v729_v22 }
 0x128   : > { %v1560_v25 = vsel %vm392_vm9, %v1504_v59, 2147483647  ;;  %vm399_vm10 = vcmp.eq.f32.partialorder %v1424_v32, %v377_v24  ;;  %v1594_v6 = vsel %vm750_vm13, %v1504_v59, 2147483647 }
 0x129   : > { %v1565_v27 = vsel %vm399_vm10, %v1504_v59, 2147483647  ;;  %v451_v28 = vshra.s32 %v1560_v25, 16  ;;  %v913_v11 = vshra.s32 %v1594_v6, 16 }
 0x12a   : > { %v549_v29 = vshra.s32 %v1565_v27, 16 }
 0x12b   : > { %v1573_v33 = vcvt.s32.f32 %v451_v28  ;;  %v1606_v14 = vcvt.s32.f32 %v913_v11 }
 0x12c   : > { %v1571_v31 = vcvt.s32.f32 %v549_v29 }
 0x12e   : > { %v381_v34 = vpop.xlane.xlu2 %380  ;;  %v379_v58 = vpop.xlane.xlu1 %378  ;;  %790 = vmin.xlane.f32.xlu0 %v1569_v30  ;;  %552 = vmin.xlane.f32.xlu1 %v1571_v31 }
 0x12f   : > { %vm400_vm11 = vcmp.eq.f32.partialorder %v1433_v35, %v379_v58  ;;  %454 = vmin.xlane.f32.xlu2 %v1573_v33  ;;  %v713_v32 = vpop.xlane.xlu0 %712  ;;  %vm401_vm2 = vcmp.eq.f32.partialorder %v1444_v39, %v381_v34 }
 0x130   : > { %v1580_v60 = vsel %vm400_vm11, %v1504_v59, 2147483647  ;;  %vm742_vm12 = vcmp.eq.f32.partialorder %v1440_v37, %v713_v32 }
 0x131   : > { %v1584_v61 = vsel %vm742_vm12, %v1504_v59, 2147483647  ;;  %v563_v0 = vshra.s32 %v1580_v60, 16 }
 0x132   : > { %v801_v1 = vshra.s32 %v1584_v61, 16 }
 0x133   : > { %v1589_v3 = vcvt.s32.f32 %v563_v0 }
 0x134   : > { %v1591_v35 = vcvt.s32.f32 %v801_v1 }
 0x136   : > { %v365_v8 = vpop.xlane.xlu1 %364  ;;  %v367_v9 = vpop.xlane.xlu2 %366  ;;  %566 = vmin.xlane.f32.xlu0 %v1589_v3  ;;  %804 = vmin.xlane.f32.xlu1 %v1591_v35 }
 0x137   : > { %vm393_vm14 = vcmp.eq.f32.partialorder %v1442_v38, %v365_v8  ;;  %v731_v37 = vpop.xlane.xlu0 %730  ;;  %vm394_vm15 = vcmp.eq.f32.partialorder %v1451_v41, %v367_v9 }
 0x138   : > { %v1600_v36 = vsel %vm393_vm14, %v1504_v59, 2147483647  ;;  %vm751_vm0 = vcmp.eq.f32.partialorder %v1453_v42, %v731_v37  ;;  %v1611_v18 = vsel %vm394_vm15, %v1504_v59, 2147483647 }
 0x139   : > { %v465_v13 = vshra.s32 %v1600_v36, 16  ;;  %v1614_v38 = vsel %vm751_vm0, %v1504_v59, 2147483647  ;;  %v479_v24 = vshra.s32 %v1611_v18, 16 }
 0x13a   : > { %v927_v26 = vshra.s32 %v1614_v38, 16 }
 0x13b   : > { %v1608_v17 = vcvt.s32.f32 %v465_v13  ;;  %v1633_v58 = vcvt.s32.f32 %v479_v24 }
 0x13c   : > { %v1635_v32 = vcvt.s32.f32 %v927_v26 }
 0x13e   : > { %v715_v22 = vpop.xlane.xlu1 %714  ;;  %v717_v23 = vpop.xlane.xlu2 %716  ;;  %916 = vmin.xlane.f32.xlu0 %v1606_v14  ;;  %468 = vmin.xlane.f32.xlu1 %v1608_v17 }
 0x13f   : > { %vm743_vm1 = vcmp.eq.f32.partialorder %v1449_v40, %v715_v22  ;;  %v383_v41 = vpop.xlane.xlu0 %382  ;;  %vm744_vm3 = vcmp.eq.f32.partialorder %v1458_v43, %v717_v23  ;;  %v1631_v40 = vsel %vm401_vm2, %v1504_v59, 2147483647 }
 0x140   : > { %v1620_v42 = vsel %vm743_vm1, %v1504_v59, 2147483647  ;;  %vm402_vm4 = vcmp.eq.f32.partialorder %v1460_v44, %v383_v41  ;;  %v1638_v0 = vsel %vm744_vm3, %v1504_v59, 2147483647  ;;  %v577_v1 = vshra.s32 %v1631_v40, 16 }
 0x141   : > { %v815_v28 = vshra.s32 %v1620_v42, 16  ;;  %v1641_v39 = vsel %vm402_vm4, %v1504_v59, 2147483647  ;;  %v829_v8 = vshra.s32 %v1638_v0, 16 }
 0x142   : > { %v591_v9 = vshra.s32 %v1641_v39, 16  ;;  %v1651_v37 = vcvt.s32.f32 %v577_v1 }
 0x143   : > { %v1628_v29 = vcvt.s32.f32 %v815_v28  ;;  %v1656_v13 = vcvt.s32.f32 %v829_v8 }
 0x144   : > { %v1658_v22 = vcvt.s32.f32 %v591_v9 }
 0x145   : > { %818 = vmin.xlane.f32.xlu2 %v1628_v29 }
 0x146   : > { %v733_v43 = vpop.xlane.xlu1 %732  ;;  %v369_v34 = vpop.xlane.xlu2 %368  ;;  %482 = vmin.xlane.f32.xlu0 %v1633_v58  ;;  %930 = vmin.xlane.f32.xlu1 %v1635_v32 }
 0x147   : > { %v719_v44 = vpop.xlane.xlu0 %718  ;;  %vm752_vm5 = vcmp.eq.f32.partialorder %v1465_v45, %v733_v43  ;;  %vm395_vm8 = vcmp.eq.f32.partialorder %v1467_v46, %v369_v34 }
 0x148   : > { %vm745_vm6 = vcmp.eq.f32.partialorder %v1469_v47, %v719_v44  ;;  %v1654_v11 = vsel %vm752_vm5, %v1504_v59, 2147483647 }
 0x149   : > { %v1661_v23 = vsel %vm745_vm6, %v1504_v59, 2147483647  ;;  %v941_v47 = vshra.s32 %v1654_v11, 16 }
 0x14a   : > { %2183 = vst [vmem:[#allocation6_spill] sm:$0xff] %v1661_v23  ;;  %v843_v28 = vshra.s32 %v1661_v23, 16 }
 0x14b   : > { %v1676_v44 = vcvt.s32.f32 %v941_v47 }
 0x14c   : > { %v1683_v8 = vcvt.s32.f32 %v843_v28 }
 0x14d   : > { %580 = vmin.xlane.f32.xlu2 %v1651_v37 }
 0x14e   : > { %v385_v41 = vpop.xlane.xlu1 %384  ;;  %v735_v24 = vpop.xlane.xlu2 %734  ;;  %832 = vmin.xlane.f32.xlu0 %v1656_v13  ;;  %594 = vmin.xlane.f32.xlu1 %v1658_v22  ;;  %2185 = vst [vmem:[#allocation8_spill] sm:$0xff] %v1683_v8 }
 0x14f   : > { %vm403_vm7 = vcmp.eq.f32.partialorder %v1474_v48, %v385_v41  ;;  %v371_v45 = vpop.xlane.xlu0 %370  ;;  %vm753_vm9 = vcmp.eq.f32.partialorder %v1476_v49, %v735_v24  ;;  %v1679_v48 = vsel %vm395_vm8, %v1504_v59, 2147483647 }
 0x150   : > { %v1669_v26 = vsel %vm403_vm7, %v1504_v59, 2147483647  ;;  %vm396_vm10 = vcmp.eq.f32.partialorder %v1478_v50, %v371_v45  ;;  %v1686_v9 = vsel %vm753_vm9, %v1504_v59, 2147483647  ;;  %v493_v41 = vshra.s32 %v1679_v48, 16 }
 0x151   : > { %v605_v43 = vshra.s32 %v1669_v26, 16  ;;  %v1689_v46 = vsel %vm396_vm10, %v1504_v59, 2147483647  ;;  %v955_v24 = vshra.s32 %v1686_v9, 16 }
 0x152   : > { %v507_v45 = vshra.s32 %v1689_v46, 16  ;;  %v1699_v47 = vcvt.s32.f32 %v493_v41 }
 0x153   : > { %v1681_v1 = vcvt.s32.f32 %v605_v43  ;;  %v1704_v43 = vcvt.s32.f32 %v955_v24 }
 0x154   : > { %v1706_v23 = vcvt.s32.f32 %v507_v45 }
 0x155   : > { %2184 = vst [vmem:[#allocation7_spill] sm:$0xff] %v1681_v1  ;;  %944 = vmin.xlane.f32.xlu2 %v1676_v44 }
 0x156   : > { %v721_v49 = vpop.xlane.xlu1 %720  ;;  %v387_v34 = vpop.xlane.xlu2 %386  ;;  %608 = vmin.xlane.f32.xlu0 %v1681_v1  ;;  %846 = vmin.xlane.f32.xlu1 %v1683_v8  ;;  %2186 = vst [vmem:[#allocation9_spill] sm:$0xff] %v1706_v23 }
 0x157   : > { %v737_v50 = vpop.xlane.xlu0 %736  ;;  %vm746_vm11 = vcmp.eq.f32.partialorder %v1483_v51, %v721_v49  ;;  %vm404_vm14 = vcmp.eq.f32.partialorder %v1485_v52, %v387_v34 }
 0x158   : > { %vm754_vm12 = vcmp.eq.f32.partialorder %v1487_v53, %v737_v50  ;;  %v1702_v28 = vsel %vm746_vm11, %v1504_v59, 2147483647  ;;  %v1726_v45 = vsel %vm404_vm14, %v1504_v59, 2147483647 }
 0x159   : > { %v1709_v8 = vsel %vm754_vm12, %v1504_v59, 2147483647  ;;  %v857_v53 = vshra.s32 %v1702_v28, 16 }
 0x15a   : > { %2187 = vst [vmem:[#allocation10_spill] sm:$0xff] %v1709_v8  ;;  %v969_v50 = vshra.s32 %v1709_v8, 16 }
 0x15b   : > { %v1723_v24 = vcvt.s32.f32 %v857_v53 }
 0x15d   : > { %496 = vmin.xlane.f32.xlu2 %v1699_v47 }
 0x15e   : > { %v373_v1 = vpop.xlane.xlu1 %372  ;;  %958 = vmin.xlane.f32.xlu0 %v1704_v43  ;;  %510 = vmin.xlane.f32.xlu1 %v1706_v23  ;;  %v723_v51 = vpop.xlane.xlu2 %722  ;;  %v1728_v23 = vcvt.s32.f32 %v969_v50 }
 0x15f   : > { %vm397_vm13 = vcmp.eq.f32.partialorder %v1492_v54, %v373_v1  ;;  %vm747_vm15 = vcmp.eq.f32.partialorder %v1494_v55, %v723_v51  ;;  %v389_v8 = vpop.xlane.xlu0 %388  ;;  %v619_v55 = vshra.s32 %v1726_v45, 16 }
 0x160   : > { %v1717_v49 = vsel %vm397_vm13, %v1504_v59, 2147483647  ;;  %2188 = vst [vmem:[#allocation11_spill] sm:$0xff] %v1728_v23  ;;  %v1733_v1 = vsel %vm747_vm15, %v1504_v59, 2147483647  ;;  %vm405_vm0 = vcmp.eq.f32.partialorder %v1496_v56, %v389_v8 }
 0x161   : > { %v521_v41 = vshra.s32 %v1717_v49, 16  ;;  %v871_v34 = vshra.s32 %v1733_v1, 16  ;;  %v1742_v51 = vcvt.s32.f32 %v619_v55  ;;  %v1745_v53 = vsel %vm405_vm0, %v1504_v59, 2147483647 }
 0x162   : > { %2189 = vst [vmem:[#allocation12_spill] sm:$0xff] %v1745_v53  ;;  %v772_v55 = vand.u32 65535, %v1512_v63 }
 0x163   : > { %v1730_v54 = vcvt.s32.f32 %v521_v41  ;;  %v1747_v50 = vcvt.s32.f32 %v871_v34 }
 0x165   : > { %860 = vmin.xlane.f32.xlu2 %v1723_v24  ;;  %2190 = vst [vmem:[#allocation13_spill] sm:$0xff] %v1747_v50 }
 0x166   : > { %972 = vmin.xlane.f32.xlu1 %v1728_v23  ;;  %524 = vmin.xlane.f32.xlu0 %v1730_v54  ;;  %v739_v52 = vpop.xlane.xlu1 %738  ;;  %v633_v23 = vshra.s32 %v1745_v53, 16  ;;  %v774_v53 = vcvt.s32.f32 %v772_v55  ;;  %v436_v55 = vand.u32 65535, %v1544_v16 }
 0x167   : > { %vm755_vm1 = vcmp.eq.f32.partialorder %v1501_v57, %v739_v52  ;;  %v422_v52 = vand.u32 65535, %v1509_v62  ;;  %v534_v62 = vand.u32 65535, %v1523_v5 }
 0x168   : > { %v1750_v41 = vsel %vm755_vm1, %v1504_v59, 2147483647  ;;  %v1756_v8 = vcvt.s32.f32 %v633_v23 }
 0x169   : > { %v983_v56 = vshra.s32 %v1750_v41, 16  ;;  %v424_v59 = vcvt.s32.f32 %v422_v52  ;;  %v536_v63 = vcvt.s32.f32 %v534_v62 }
 0x16b   : > { %v1758_v57 = vcvt.s32.f32 %v983_v56 }
 0x16d   : > { %622 = vmin.xlane.f32.xlu2 %v1742_v51  ;;  %2191 = vst [vmem:[#allocation14_spill] sm:$0xff] %v1758_v57 }
 0x16e   : > { %874 = vmin.xlane.f32.xlu0 %v1747_v50 }
 0x175   : > { %636 = vmin.xlane.f32.xlu2 %v1756_v8 }
 0x176   : > { %986 = vmin.xlane.f32.xlu0 %v1758_v57 }
 0x189   : > { %v1764_v34 = vpop.xlane.xlu1 %426 }
 0x18a   : > { %2192 = vst [vmem:[#allocation15_spill] sm:$0xff] %v1764_v34  ;;  %v1766_v50 = vpop.xlane.xlu2 %776  ;;  %vm428_vm2 = vcmp.eq.f32.partialorder %v1516_v2, %v1764_v34  ;;  %v884_v2 = vand.u32 65535, %v1528_v7  ;;  %v786_v7 = vand.u32 65535, %v1552_v20 }
 0x18b   : > { %vm778_vm3 = vcmp.eq.f32.partialorder %v1518_v4, %v1766_v50  ;;  %v429_v23 = vsel %vm428_vm2, %v424_v59, inf  ;;  %v438_v4 = vcvt.s32.f32 %v436_v55 }
 0x18c   : > { %v779_v56 = vsel %vm778_vm3, %v774_v53, inf  ;;  %430 = vmin.xlane.f32.xlu2 %v429_v23  ;;  %v898_v23 = vand.u32 65535, %v1540_v15 }
 0x18d   : > { %780 = vmin.xlane.f32.xlu1 %v779_v56  ;;  %v450_v56 = vand.u32 65535, %v1560_v25  ;;  %v548_v25 = vand.u32 65535, %v1565_v27 }
 0x18f   : > { %v452_v15 = vcvt.s32.f32 %v450_v56 }
 0x191   : > { %v1779_v34 = vpop.xlane.xlu1 %888 }
 0x192   : > { %v1773_v57 = vpop.xlane.xlu2 %538  ;;  %vm890_vm5 = vcmp.eq.f32.partialorder %v1532_v10, %v1779_v34 }
 0x193   : > { %vm540_vm4 = vcmp.eq.f32.partialorder %v1534_v12, %v1773_v57  ;;  %v886_v12 = vcvt.s32.f32 %v884_v2  ;;  %v562_v2 = vand.u32 65535, %v1580_v60 }
 0x194   : > { %v541_v52 = vsel %vm540_vm4, %v536_v63, inf  ;;  %v900_v63 = vcvt.s32.f32 %v898_v23 }
 0x195   : > { %542 = vmin.xlane.f32.xlu0 %v541_v52  ;;  %v891_v16 = vsel %vm890_vm5, %v886_v12, inf }
 0x199   : > { %v1781_v59 = vpop.xlane.xlu0 %440 }
 0x19a   : > { %v1785_v5 = vpop.xlane.xlu2 %902  ;;  %vm442_vm6 = vcmp.eq.f32.partialorder %v1549_v19, %v1781_v59  ;;  %v788_v19 = vcvt.s32.f32 %v786_v7 }
 0x19b   : > { %v443_v53 = vsel %vm442_vm6, %v438_v4, inf  ;;  %vm904_vm7 = vcmp.eq.f32.partialorder %v1554_v21, %v1785_v5  ;;  %v800_v4 = vand.u32 65535, %v1584_v61 }
 0x19c   : > { %444 = vmin.xlane.f32.xlu1 %v443_v53  ;;  %v905_v55 = vsel %vm904_vm7, %v900_v63, inf  ;;  %v564_v53 = vcvt.s32.f32 %v562_v2  ;;  %v814_v63 = vand.u32 65535, %v1620_v42 }
 0x19d   : > { %892 = vmin.xlane.f32.xlu0 %v891_v16  ;;  %v550_v16 = vcvt.s32.f32 %v548_v25  ;;  %v828_v25 = vand.u32 65535, %v1638_v0  ;;  %v926_v0 = vand.u32 65535, %v1614_v38 }
 0x1a1   : > { %v1794_v10 = vpop.xlane.xlu0 %790  ;;  %v1796_v62 = vpop.xlane.xlu1 %552 }
 0x1a2   : > { %v1798_v52 = vpop.xlane.xlu2 %454  ;;  %vm792_vm8 = vcmp.eq.f32.partialorder %v1569_v30, %v1794_v10  ;;  %vm554_vm10 = vcmp.eq.f32.partialorder %v1571_v31, %v1796_v62  ;;  %v912_v31 = vand.u32 65535, %v1594_v6 }
 0x1a3   : > { %v793_v20 = vsel %vm792_vm8, %v788_v19, inf  ;;  %vm456_vm9 = vcmp.eq.f32.partialorder %v1573_v33, %v1798_v52  ;;  %v802_v33 = vcvt.s32.f32 %v800_v4  ;;  %v555_v60 = vsel %vm554_vm10, %v550_v16, inf }
 0x1a4   : > { %906 = vmin.xlane.f32.xlu1 %v905_v55  ;;  %794 = vmin.xlane.f32.xlu2 %v793_v20  ;;  %v457_v21 = vsel %vm456_vm9, %v452_v15, inf  ;;  %v914_v56 = vcvt.s32.f32 %v912_v31  ;;  %v816_v15 = vcvt.s32.f32 %v814_v63  ;;  %v2193_v63 = vld [vmem:[#allocation7_spill] sm:$0xff] }
 0x1a5   : > { %458 = vmin.xlane.f32.xlu0 %v457_v21  ;;  %v576_v21 = vand.u32 65535, %v1631_v40  ;;  %v830_v40 = vcvt.s32.f32 %v828_v25  ;;  %v506_v25 = vand.u32 65535, %v1689_v46 }
 0x1a7   : > { %v578_v4 = vcvt.s32.f32 %v576_v21 }
 0x1a9   : > { %v1809_v30 = vpop.xlane.xlu0 %566  ;;  %v1811_v12 = vpop.xlane.xlu1 %804 }
 0x1aa   : > { %vm568_vm11 = vcmp.eq.f32.partialorder %v1589_v3, %v1809_v30  ;;  %vm806_vm12 = vcmp.eq.f32.partialorder %v1591_v35, %v1811_v12  ;;  %v464_v35 = vand.u32 65535, %v1600_v36  ;;  %v478_v36 = vand.u32 65535, %v1611_v18 }
 0x1ab   : > { %v569_v27 = vsel %vm568_vm11, %v564_v53, inf  ;;  %v807_v61 = vsel %vm806_vm12, %v802_v33, inf  ;;  %v940_v33 = vand.u32 65535, %v1654_v11 }
 0x1ac   : > { %570 = vmin.xlane.f32.xlu1 %v569_v27  ;;  %556 = vmin.xlane.f32.xlu2 %v555_v60  ;;  %v480_v2 = vcvt.s32.f32 %v478_v36  ;;  %v590_v27 = vand.u32 65535, %v1641_v39  ;;  %v492_v39 = vand.u32 65535, %v1679_v48  ;;  %v856_v36 = vand.u32 65535, %v1702_v28 }
 0x1ad   : > { %808 = vmin.xlane.f32.xlu0 %v807_v61  ;;  %v942_v60 = vcvt.s32.f32 %v940_v33  ;;  %v928_v61 = vcvt.s32.f32 %v926_v0  ;;  %v508_v28 = vcvt.s32.f32 %v506_v25  ;;  %v618_v33 = vand.u32 65535, %v1726_v45  ;;  %v2202_v25 = vld [vmem:[#allocation15_spill] sm:$0xff] }
 0x1ae   : > { %v592_v38 = vcvt.s32.f32 %v590_v27  ;;  %v520_v27 = vand.u32 65535, %v1717_v49  ;;  %v2197_v49 = vld [vmem:[#allocation13_spill] sm:$0xff] }
 0x1b1   : > { %v1818_v23 = vpop.xlane.xlu0 %916  ;;  %v1820_v7 = vpop.xlane.xlu1 %468 }
 0x1b2   : > { %vm918_vm13 = vcmp.eq.f32.partialorder %v1606_v14, %v1818_v23  ;;  %vm470_vm14 = vcmp.eq.f32.partialorder %v1608_v17, %v1820_v7  ;;  %v466_v14 = vcvt.s32.f32 %v464_v35 }
 0x1b3   : > { %v919_v3 = vsel %vm918_vm13, %v914_v56, inf }
 0x1b4   : > { %920 = vmin.xlane.f32.xlu2 %v919_v3  ;;  %v471_v42 = vsel %vm470_vm14, %v466_v14, inf  ;;  %v604_v3 = vand.u32 65535, %v1669_v26 }
 0x1b8   : > { %v1826_v19 = vpop.xlane.xlu2 %818 }
 0x1b9   : > { %v1830_v6 = vpop.xlane.xlu0 %482  ;;  %v1832_v55 = vpop.xlane.xlu1 %930  ;;  %vm820_vm15 = vcmp.eq.f32.partialorder %v1628_v29, %v1826_v19 }
 0x1ba   : > { %v821_v20 = vsel %vm820_vm15, %v816_v15, inf  ;;  %vm484_vm0 = vcmp.eq.f32.partialorder %v1633_v58, %v1830_v6  ;;  %vm932_vm3 = vcmp.eq.f32.partialorder %v1635_v32, %v1832_v55  ;;  %v494_v15 = vcvt.s32.f32 %v492_v39  ;;  %v2198_v39 = vld [vmem:[#allocation10_spill] sm:$0xff] }
 0x1bb   : > { %822 = vmin.xlane.f32.xlu1 %v821_v20  ;;  %v485_v16 = vsel %vm484_vm0, %v480_v2, inf  ;;  %v933_v31 = vsel %vm932_vm3, %v928_v61, inf  ;;  %vm653_vm3 = vcmask 195712  }
 0x1bc   : > { %472 = vmin.xlane.f32.xlu2 %v471_v42 }
 0x1c0   : > { %v1841_v17 = vpop.xlane.xlu2 %580 }
 0x1c1   : > { %v1843_v53 = vpop.xlane.xlu0 %832  ;;  %v1845_v29 = vpop.xlane.xlu1 %594  ;;  %vm582_vm1 = vcmp.eq.f32.partialorder %v1651_v37, %v1841_v17 }
 0x1c2   : > { %v583_v18 = vsel %vm582_vm1, %v578_v4, inf  ;;  %vm834_vm2 = vcmp.eq.f32.partialorder %v1656_v13, %v1843_v53  ;;  %vm596_vm4 = vcmp.eq.f32.partialorder %v1658_v22, %v1845_v29  ;;  %v954_v22 = vand.u32 65535, %v1686_v9  ;;  %v2194_v9 = vld [vmem:[#allocation6_spill] sm:$0xff] }
 0x1c3   : > { %486 = vmin.xlane.f32.xlu1 %v485_v16  ;;  %584 = vmin.xlane.f32.xlu0 %v583_v18  ;;  %v835_v58 = vsel %vm834_vm2, %v830_v40, inf  ;;  %v597_v32 = vsel %vm596_vm4, %v592_v38, inf  ;;  %v842_v21 = vand.u32 65535, %v2194_v9  ;;  %v858_v40 = vcvt.s32.f32 %v856_v36  ;;  %v2201_v36 = vld [vmem:[#allocation14_spill] sm:$0xff] }
 0x1c4   : > { %836 = vmin.xlane.f32.xlu2 %v835_v58  ;;  %v956_v20 = vcvt.s32.f32 %v954_v22  ;;  %v522_v38 = vcvt.s32.f32 %v520_v27  ;;  %v545_v27 = vcvt.f32.s32 %v1773_v57  ;;  %vm649_vm2 = vcmask 130112  }
 0x1c5   : > { %v844_v16 = vcvt.s32.f32 %v842_v21  ;;  %vm657_vm4 = vcmask 261312  }
 0x1c8   : > { %v1856_v37 = vpop.xlane.xlu2 %944 }
 0x1c9   : > { %v1860_v13 = vpop.xlane.xlu0 %608  ;;  %vm946_vm5 = vcmp.eq.f32.partialorder %v1676_v44, %v1856_v37  ;;  %v1864_v56 = vpop.xlane.xlu1 %846  ;;  %v606_v44 = vcvt.s32.f32 %v604_v3  ;;  %v2199_v3 = vld [vmem:[#allocation12_spill] sm:$0xff] }
 0x1ca   : > { %v947_v11 = vsel %vm946_vm5, %v942_v60, inf  ;;  %vm610_vm6 = vcmp.eq.f32.partialorder %v2193_v63, %v1860_v13  ;;  %v870_v60 = vand.u32 65535, %v1733_v1  ;;  %v632_v22 = vand.u32 65535, %v2199_v3 }
 0x1cb   : > { %948 = vmin.xlane.f32.xlu1 %v947_v11  ;;  %934 = vmin.xlane.f32.xlu0 %v933_v31  ;;  %v611_v42 = vsel %vm610_vm6, %v606_v44, inf  ;;  %v982_v44 = vand.u32 65535, %v1750_v41  ;;  %vm661_vm5 = vcmask 326912   ;;  %vm665_vm6 = vcmask 392512  }
 0x1cc   : > { %598 = vmin.xlane.f32.xlu2 %v597_v32  ;;  %v872_v31 = vcvt.s32.f32 %v870_v60 }
 0x1d0   : > { %v1871_v35 = vpop.xlane.xlu2 %496 }
 0x1d1   : > { %v1873_v14 = vpop.xlane.xlu0 %958  ;;  %vm498_vm7 = vcmp.eq.f32.partialorder %v1699_v47, %v1871_v35  ;;  %v1882_v2 = vpop.xlane.xlu1 %510  ;;  %v2195_v47 = vld [vmem:[#allocation8_spill] sm:$0xff] }
 0x1d2   : > { %v499_v48 = vsel %vm498_vm7, %v494_v15, inf  ;;  %vm960_vm8 = vcmp.eq.f32.partialorder %v1704_v43, %v1873_v14  ;;  %vm848_vm9 = vcmp.eq.f32.partialorder %v2195_v47, %v1864_v56  ;;  %v2196_v43 = vld [vmem:[#allocation9_spill] sm:$0xff]  ;;  %v433_v47 = vcvt.f32.s32 %v2202_v25 }
 0x1d3   : > { %612 = vmin.xlane.f32.xlu1 %v611_v42  ;;  %500 = vmin.xlane.f32.xlu0 %v499_v48  ;;  %v961_v26 = vsel %vm960_vm8, %v956_v20, inf  ;;  %vm512_vm10 = vcmp.eq.f32.partialorder %v2196_v43, %v1882_v2  ;;  %v849_v46 = vsel %vm848_vm9, %v844_v16, inf  ;;  %v634_v20 = vcvt.s32.f32 %v632_v22 }
 0x1d4   : > { %962 = vmin.xlane.f32.xlu2 %v961_v26  ;;  %v513_v0 = vsel %vm512_vm10, %v508_v28, inf  ;;  %v984_v26 = vcvt.s32.f32 %v982_v44  ;;  %v434_v43 = vshll.u32 %v433_v47, 16  ;;  %v797_v22 = vcvt.f32.s32 %v1794_v10 }
 0x1d5   : > { %vm669_vm7 = vcmask 458112   ;;  %vm673_vm8 = vcmask 523712   ;;  %vm677_vm9 = vcmask 589312   ;;  %vm681_vm10 = vcmask 654912  }
 0x1d8   : > { %v1886_v4 = vpop.xlane.xlu2 %860 }
 0x1d9   : > { %v1890_v18 = vpop.xlane.xlu0 %524  ;;  %vm862_vm11 = vcmp.eq.f32.partialorder %v1723_v24, %v1886_v4  ;;  %v620_v24 = vcvt.s32.f32 %v618_v33  ;;  %v1909_v63 = vpop.xlane.xlu1 %972 }
 0x1da   : > { %v863_v58 = vsel %vm862_vm11, %v858_v40, inf  ;;  %vm526_vm12 = vcmp.eq.f32.partialorder %v1730_v54, %v1890_v18  ;;  %v968_v54 = vand.u32 65535, %v2198_v39  ;;  %v783_v40 = vcvt.f32.s32 %v1766_v50 }
 0x1db   : > { %864 = vmin.xlane.f32.xlu1 %v863_v58  ;;  %850 = vmin.xlane.f32.xlu0 %v849_v46  ;;  %v527_v32 = vsel %vm526_vm12, %v522_v38, inf  ;;  %v546_v38 = vshll.u32 %v545_v27, 16  ;;  %vm685_vm11 = vcmask 720512   ;;  %vm689_vm12 = vcmask 786112  }
 0x1dc   : > { %514 = vmin.xlane.f32.xlu2 %v513_v0  ;;  %v970_v42 = vcvt.s32.f32 %v968_v54  ;;  %v784_v46 = vshll.u32 %v783_v40, 16 }
 0x1e0   : > { %v1899_v61 = vpop.xlane.xlu2 %622 }
 0x1e1   : > { %v1901_v11 = vpop.xlane.xlu0 %874  ;;  %vm624_vm13 = vcmp.eq.f32.partialorder %v1742_v51, %v1899_v61  ;;  %v2200_v51 = vld [vmem:[#allocation11_spill] sm:$0xff] }
 0x1e2   : > { %v625_v45 = vsel %vm624_vm13, %v620_v24, inf  ;;  %vm876_vm14 = vcmp.eq.f32.partialorder %v2197_v49, %v1901_v11  ;;  %vm974_vm15 = vcmp.eq.f32.partialorder %v2200_v51, %v1909_v63  ;;  %v461_v51 = vcvt.f32.s32 %v1798_v52 }
 0x1e3   : > { %528 = vmin.xlane.f32.xlu1 %v527_v32  ;;  %626 = vmin.xlane.f32.xlu0 %v625_v45  ;;  %v877_v1 = vsel %vm876_vm14, %v872_v31, inf  ;;  %v975_v21 = vsel %vm974_vm15, %v970_v42, inf  ;;  %v447_v32 = vcvt.f32.s32 %v1781_v59  ;;  %v798_v59 = vshll.u32 %v797_v22, 16 }
 0x1e4   : > { %878 = vmin.xlane.f32.xlu2 %v877_v1  ;;  %v2203_v1 = vld [vmem:[#allocation5_spill] sm:$0xff]  ;;  %v811_v52 = vcvt.f32.s32 %v1811_v12  ;;  %v475_v12 = vcvt.f32.s32 %v1820_v7  ;;  %vm693_vm13 = vcmask 851712   ;;  %vm697_vm14 = vcmask 917312  }
 0x1e5   : > { %v448_v49 = vshll.u32 %v447_v32, 16  ;;  %v647_v39 = vadd.s32 4294967288, %v2203_v1  ;;  %vm701_vm15 = vcmask 982912  }
 0x1e8   : > { %v1914_v15 = vpop.xlane.xlu2 %636 }
 0x1e9   : > { %v1916_v48 = vpop.xlane.xlu0 %986  ;;  %vm638_vm0 = vcmp.eq.f32.partialorder %v1756_v8, %v1914_v15 }
 0x1ea   : > { %v639_v9 = vsel %vm638_vm0, %v634_v20, inf  ;;  %vm988_vm1 = vcmp.eq.f32.partialorder %v2201_v36, %v1916_v48  ;;  %v651_v36 = vadd.s32 4294967280, %v2203_v1  ;;  %vm705_vm0 = vcmask 1048512  }
 0x1eb   : > { %640 = vmin.xlane.f32.xlu1 %v639_v9  ;;  %976 = vmin.xlane.f32.xlu0 %v975_v21  ;;  %v989_v41 = vsel %vm988_vm1, %v984_v26, inf  ;;  %v462_v21 = vshll.u32 %v461_v51, 16 }
 0x1ec   : > { %990 = vmin.xlane.f32.xlu2 %v989_v41 }
 0x1ff   : > { %v431_v16 = vpop.xlane.xlu2 %430 }
 0x200   : > { %v432_v28 = vcvt.f32.s32 %v431_v16  ;;  %v781_v58 = vpop.xlane.xlu1 %780 }
 0x201   : > { %v782_v8 = vcvt.f32.s32 %v781_v58 }
 0x202   : > { %v435_v0 = vadd.s32 %v434_v43, %v432_v28 }
 0x203   : > { %v785_v33 = vadd.s32 %v784_v46, %v782_v8 }
 0x204   : > { %v646_v57 = vperm.slane %v435_v0, %v2203_v1  ;;  %v812_v0 = vshll.u32 %v811_v52, 16 }
 0x205   : > { %v996_v40 = vperm.slane %v785_v33, %v2203_v1 }
 0x208   : > { %v543_v60 = vpop.xlane.xlu0 %542 }
 0x209   : > { %v544_v24 = vcvt.f32.s32 %v543_v60 }
 0x20b   : > { %v1925_v31 = vadd.s32 %v546_v38, %v544_v24 }
 0x20f   : > { %v445_v45 = vpop.xlane.xlu1 %444 }
 0x210   : > { %v1928_v50 = vpop.xlane.xlu0 %892  ;;  %v446_v54 = vcvt.f32.s32 %v445_v45  ;;  %v825_v45 = vcvt.f32.s32 %v1826_v19 }
 0x212   : > { %v449_v3 = vadd.s32 %v448_v49, %v446_v54  ;;  %v655_v54 = vadd.s32 4294967272, %v2203_v1 }
 0x214   : > { %v648_v44 = vperm.slane %v449_v3, %v647_v39 }
 0x216   : > { %v650_v20 = vsel %vm649_vm2, %v648_v44, %v646_v57  ;;  %v476_v57 = vshll.u32 %v475_v12, 16 }
 0x217   : > { %v795_v42 = vpop.xlane.xlu2 %794  ;;  %v1937_v16 = vpop.xlane.xlu1 %906 }
 0x218   : > { %v796_v26 = vcvt.f32.s32 %v795_v42  ;;  %v459_v9 = vpop.xlane.xlu0 %458  ;;  %v489_v42 = vcvt.f32.s32 %v1830_v6 }
 0x219   : > { %v460_v41 = vcvt.f32.s32 %v459_v9 }
 0x21a   : > { %v799_v25 = vadd.s32 %v798_v59, %v796_v26  ;;  %v839_v26 = vcvt.f32.s32 %v1843_v53 }
 0x21b   : > { %v463_v47 = vadd.s32 %v462_v21, %v460_v41  ;;  %v490_v41 = vshll.u32 %v489_v42, 16 }
 0x21c   : > { %v997_v10 = vperm.slane %v799_v25, %v647_v39  ;;  %v826_v39 = vshll.u32 %v825_v45, 16  ;;  %v659_v25 = vadd.s32 4294967264, %v2203_v1  ;;  %v573_v45 = vcvt.f32.s32 %v1809_v30 }
 0x21d   : > { %v652_v43 = vperm.slane %v463_v47, %v651_v36 }
 0x21e   : > { %v998_v28 = vsel %vm649_vm2, %v997_v10, %v996_v40  ;;  %v840_v10 = vshll.u32 %v839_v26, 16  ;;  %v531_v26 = vcvt.f32.s32 %v1890_v18 }
 0x21f   : > { %v654_v58 = vsel %vm653_vm3, %v652_v43, %v650_v20  ;;  %v1941_v46 = vpop.xlane.xlu2 %556  ;;  %v1943_v24 = vpop.xlane.xlu1 %570 }
 0x220   : > { %v809_v8 = vpop.xlane.xlu0 %808 }
 0x221   : > { %v810_v27 = vcvt.f32.s32 %v809_v8 }
 0x223   : > { %v813_v60 = vadd.s32 %v812_v0, %v810_v27 }
 0x225   : > { %v999_v38 = vperm.slane %v813_v60, %v651_v36  ;;  %v895_v60 = vcvt.f32.s32 %v1779_v34  ;;  %v615_v34 = vcvt.f32.s32 %v1860_v13  ;;  %v867_v13 = vcvt.f32.s32 %v1886_v4 }
 0x227   : > { %v1000_v33 = vsel %vm653_vm3, %v999_v38, %v998_v28  ;;  %v1945_v32 = vpop.xlane.xlu2 %920  ;;  %v909_v38 = vcvt.f32.s32 %v1785_v5  ;;  %v853_v5 = vcvt.f32.s32 %v1864_v56  ;;  %v1986_v56 = vshll.u32 %v615_v34, 16 }
 0x228   : > { %v868_v18 = vshll.u32 %v867_v13, 16 }
 0x229   : > { %v910_v30 = vshll.u32 %v909_v38, 16 }
 0x22e   : > { %v823_v49 = vpop.xlane.xlu1 %822 }
 0x22f   : > { %v824_v3 = vcvt.f32.s32 %v823_v49  ;;  %v473_v22 = vpop.xlane.xlu2 %472  ;;  %v923_v49 = vcvt.f32.s32 %v1818_v23 }
 0x230   : > { %v474_v44 = vcvt.f32.s32 %v473_v22  ;;  %v951_v22 = vcvt.f32.s32 %v1856_v37 }
 0x231   : > { %v827_v51 = vadd.s32 %v826_v39, %v824_v3  ;;  %v937_v39 = vcvt.f32.s32 %v1832_v55  ;;  %v601_v3 = vcvt.f32.s32 %v1845_v29  ;;  %v965_v55 = vcvt.f32.s32 %v1873_v14 }
 0x232   : > { %v477_v20 = vadd.s32 %v476_v57, %v474_v44  ;;  %v896_v57 = vshll.u32 %v895_v60, 16  ;;  %v1983_v37 = vshll.u32 %v951_v22, 16  ;;  %v979_v14 = vcvt.f32.s32 %v1909_v63 }
 0x233   : > { %v1001_v59 = vperm.slane %v827_v51, %v655_v54  ;;  %v574_v51 = vshll.u32 %v573_v45, 16  ;;  %v1977_v23 = vshll.u32 %v937_v39, 16  ;;  %v1981_v42 = vshll.u32 %v601_v3, 16 }
 0x234   : > { %v656_v9 = vperm.slane %v477_v20, %v655_v54  ;;  %v587_v54 = vcvt.f32.s32 %v1841_v17  ;;  %v924_v20 = vshll.u32 %v923_v49, 16  ;;  %v517_v17 = vcvt.f32.s32 %v1882_v2 }
 0x235   : > { %v1002_v19 = vsel %vm657_vm4, %v1001_v59, %v1000_v33  ;;  %v559_v33 = vcvt.f32.s32 %v1796_v62  ;;  %v503_v62 = vcvt.f32.s32 %v1871_v35  ;;  %v854_v35 = vshll.u32 %v853_v5, 16 }
 0x236   : > { %v658_v21 = vsel %vm657_vm4, %v656_v9, %v654_v58  ;;  %v1952_v7 = vpop.xlane.xlu0 %584  ;;  %v487_v36 = vpop.xlane.xlu1 %486  ;;  %v588_v29 = vshll.u32 %v587_v54, 16  ;;  %v629_v2 = vcvt.f32.s32 %v1899_v61  ;;  %v518_v4 = vshll.u32 %v517_v17, 16 }
 0x237   : > { %v488_v47 = vcvt.f32.s32 %v487_v36  ;;  %v837_v40 = vpop.xlane.xlu2 %836  ;;  %v560_v44 = vshll.u32 %v559_v33, 16  ;;  %v504_v59 = vshll.u32 %v503_v62, 16  ;;  %v993_v61 = vcvt.f32.s32 %v1916_v48 }
 0x238   : > { %v838_v52 = vcvt.f32.s32 %v837_v40  ;;  %v894_v40 = vcvt.f32.s32 %v1928_v50  ;;  %v922_v48 = vcvt.f32.s32 %v1945_v32  ;;  %v2033_v39 = vadd.s32 4294967216, %v2203_v1 }
 0x239   : > { %v491_v43 = vadd.s32 %v490_v41, %v488_v47  ;;  %v881_v47 = vcvt.f32.s32 %v1901_v11  ;;  %v2009_v11 = vshll.u32 %v629_v2, 16  ;;  %v2028_v45 = vshll.u32 %v993_v61, 16 }
 0x23a   : > { %v841_v28 = vadd.s32 %v840_v10, %v838_v52  ;;  %v643_v10 = vcvt.f32.s32 %v1914_v15  ;;  %v908_v52 = vcvt.f32.s32 %v1937_v16  ;;  %v2014_v15 = vadd.s32 4294967232, %v2203_v1 }
 0x23b   : > { %v660_v6 = vperm.slane %v491_v43, %v659_v25  ;;  %v558_v43 = vcvt.f32.s32 %v1941_v46  ;;  %v2011_v60 = vshll.u32 %v881_v47, 16  ;;  %v2016_v16 = vadd.s32 %v896_v57, %v894_v40 }
 0x23c   : > { %v1003_v8 = vperm.slane %v841_v28, %v659_v25  ;;  %v1996_v25 = vshll.u32 %v965_v55, 16  ;;  %v572_v28 = vcvt.f32.s32 %v1943_v24  ;;  %v2019_v46 = vshll.u32 %v643_v10, 16 }
 0x23d   : > { %v1955_v0 = vsel %vm661_vm5, %v660_v6, %v658_v21  ;;  %v663_v21 = vadd.s32 4294967256, %v2203_v1  ;;  %v2005_v6 = vshll.u32 %v531_v26, 16  ;;  %v2022_v24 = vadd.s32 4294967224, %v2203_v1 }
 0x23e   : > { %v1957_v53 = vsel %vm661_vm5, %v1003_v8, %v1002_v19  ;;  %v1959_v58 = vpop.xlane.xlu0 %934  ;;  %v1961_v27 = vpop.xlane.xlu1 %948  ;;  %v2007_v8 = vshll.u32 %v979_v14, 16  ;;  %v2024_v38 = vadd.s32 %v910_v30, %v908_v52  ;;  %v2030_v49 = vadd.s32 %v560_v44, %v558_v43 }
 0x23f   : > { %v1967_v12 = vpop.xlane.xlu2 %598  ;;  %v2035_v54 = vadd.s32 %v574_v51, %v572_v28  ;;  %v586_v22 = vcvt.f32.s32 %v1952_v7  ;;  %v667_v5 = vadd.s32 4294967248, %v2203_v1  ;;  %v1011_v30 = vperm.slane %v2016_v16, %v2014_v15 }
 0x240   : > { %v2043_v44 = vadd.s32 %v924_v20, %v922_v48  ;;  %v1013_v51 = vperm.slane %v2024_v38, %v2022_v24  ;;  %v2048_v17 = vadd.s32 4294967208, %v2203_v1  ;;  %v2063_v40 = vadd.s32 4294967192, %v2203_v1 }
 0x241   : > { %v684_v26 = vperm.slane %v2035_v54, %v2033_v39  ;;  %v2057_v14 = vadd.s32 %v588_v29, %v586_v22  ;;  %v950_v10 = vcvt.f32.s32 %v1961_v27  ;;  %v600_v52 = vcvt.f32.s32 %v1967_v12 }
 0x242   : > { %v1015_v47 = vperm.slane %v2043_v44, %v2033_v39 }
 0x243   : > { %v688_v27 = vperm.slane %v2057_v14, %v2048_v17 }
 0x246   : > { %v501_v9 = vpop.xlane.xlu0 %500  ;;  %v1989_v19 = vpop.xlane.xlu1 %612 }
 0x247   : > { %v502_v36 = vcvt.f32.s32 %v501_v9  ;;  %v1994_v41 = vpop.xlane.xlu2 %962  ;;  %v2055_v9 = vadd.s32 4294967200, %v2203_v1 }
 0x248   : > { %v964_v48 = vcvt.f32.s32 %v1994_v41 }
 0x249   : > { %v505_v63 = vadd.s32 %v504_v59, %v502_v36  ;;  %v680_v59 = vperm.slane %v2030_v49, %v2022_v24  ;;  %v603_v49 = vadd.s32 %v1981_v42, %v600_v52 }
 0x24a   : > { %v967_v42 = vadd.s32 %v1996_v25, %v964_v48 }
 0x24b   : > { %v664_v50 = vperm.slane %v505_v63, %v663_v21 }
 0x24d   : > { %v666_v33 = vsel %vm665_vm6, %v664_v50, %v1955_v0  ;;  %v676_v0 = vperm.slane %v1925_v31, %v2014_v15  ;;  %v1021_v31 = vperm.slane %v967_v42, %v2063_v40 }
 0x24e   : > { %v851_v32 = vpop.xlane.xlu0 %850  ;;  %v865_v3 = vpop.xlane.xlu1 %864 }
 0x24f   : > { %v852_v34 = vcvt.f32.s32 %v851_v32  ;;  %v866_v62 = vcvt.f32.s32 %v865_v3  ;;  %v515_v57 = vpop.xlane.xlu2 %514 }
 0x250   : > { %v516_v55 = vcvt.f32.s32 %v515_v57 }
 0x251   : > { %v855_v7 = vadd.s32 %v854_v35, %v852_v34  ;;  %v869_v13 = vadd.s32 %v868_v18, %v866_v62  ;;  %v936_v35 = vcvt.f32.s32 %v1959_v58  ;;  %v671_v58 = vadd.s32 4294967240, %v2203_v1 }
 0x252   : > { %v519_v20 = vadd.s32 %v518_v4, %v516_v55  ;;  %v614_v4 = vcvt.f32.s32 %v1989_v19 }
 0x253   : > { %v1005_v2 = vperm.slane %v855_v7, %v663_v21  ;;  %v1007_v36 = vperm.slane %v869_v13, %v667_v5  ;;  %v2070_v21 = vadd.s32 4294967184, %v2203_v1 }
 0x254   : > { %v668_v18 = vperm.slane %v519_v20, %v667_v5  ;;  %v617_v3 = vadd.s32 %v1986_v56, %v614_v4  ;;  %v703_v5 = vadd.s32 4294967176, %v2203_v1 }
 0x255   : > { %v1006_v29 = vsel %vm665_vm6, %v1005_v2, %v1957_v53  ;;  %v939_v53 = vadd.s32 %v1977_v23, %v936_v35 }
 0x256   : > { %v1008_v63 = vsel %vm669_vm7, %v1007_v36, %v1006_v29  ;;  %v670_v61 = vsel %vm669_vm7, %v668_v18, %v666_v33  ;;  %v627_v43 = vpop.xlane.xlu0 %626  ;;  %v529_v28 = vpop.xlane.xlu1 %528  ;;  %v953_v33 = vadd.s32 %v1983_v37, %v950_v10  ;;  %v696_v62 = vperm.slane %v617_v3, %v2063_v40 }
 0x257   : > { %v530_v12 = vcvt.f32.s32 %v529_v28  ;;  %v879_v50 = vpop.xlane.xlu2 %878  ;;  %v628_v22 = vcvt.f32.s32 %v627_v43  ;;  %v1017_v37 = vperm.slane %v939_v53, %v2048_v17 }
 0x258   : > { %v880_v19 = vcvt.f32.s32 %v879_v50  ;;  %v1019_v56 = vperm.slane %v953_v33, %v2055_v9 }
 0x259   : > { %v533_v32 = vadd.s32 %v2005_v6, %v530_v12  ;;  %v692_v6 = vperm.slane %v603_v49, %v2055_v9  ;;  %v631_v57 = vadd.s32 %v2009_v11, %v628_v22 }
 0x25a   : > { %v883_v34 = vadd.s32 %v2011_v60, %v880_v19 }
 0x25b   : > { %v672_v23 = vperm.slane %v533_v32, %v671_v58  ;;  %v700_v54 = vperm.slane %v631_v57, %v2070_v21 }
 0x25c   : > { %v1009_v41 = vperm.slane %v883_v34, %v671_v58 }
 0x25d   : > { %v674_v60 = vsel %vm673_vm8, %v672_v23, %v670_v61 }
 0x25e   : > { %v678_v25 = vsel %vm677_vm9, %v676_v0, %v674_v60  ;;  %v1010_v1 = vsel %vm673_vm8, %v1009_v41, %v1008_v63  ;;  %v977_v55 = vpop.xlane.xlu0 %976  ;;  %v641_v17 = vpop.xlane.xlu1 %640 }
 0x25f   : > { %v682_v7 = vsel %vm681_vm10, %v680_v59, %v678_v25  ;;  %v1012_v13 = vsel %vm677_vm9, %v1011_v30, %v1010_v1  ;;  %v978_v9 = vcvt.f32.s32 %v977_v55  ;;  %v642_v20 = vcvt.f32.s32 %v641_v17  ;;  %v991_v14 = vpop.xlane.xlu2 %990 }
 0x260   : > { %v686_v11 = vsel %vm685_vm11, %v684_v26, %v682_v7  ;;  %v1014_v15 = vsel %vm681_vm10, %v1013_v51, %v1012_v13  ;;  %v992_v16 = vcvt.f32.s32 %v991_v14 }
 0x261   : > { %v1016_v0 = vsel %vm685_vm11, %v1015_v47, %v1014_v15  ;;  %v981_v30 = vadd.s32 %v2007_v8, %v978_v9  ;;  %v645_v59 = vadd.s32 %v2019_v46, %v642_v20  ;;  %v690_v2 = vsel %vm689_vm12, %v688_v27, %v686_v11 }
 0x262   : > { %v1018_v26 = vsel %vm689_vm12, %v1017_v37, %v1016_v0  ;;  %v995_v24 = vadd.s32 %v2028_v45, %v992_v16  ;;  %v694_v38 = vsel %vm693_vm13, %v692_v6, %v690_v2 }
 0x263   : > { %v1020_v39 = vsel %vm693_vm13, %v1019_v56, %v1018_v26  ;;  %v1023_v8 = vperm.slane %v981_v30, %v2070_v21  ;;  %v704_v44 = vperm.slane %v645_v59, %v703_v5  ;;  %v698_v46 = vsel %vm697_vm14, %v696_v62, %v694_v38 }
 0x264   : > { %v1022_v51 = vsel %vm697_vm14, %v1021_v31, %v1020_v39  ;;  %v1025_v36 = vperm.slane %v995_v24, %v703_v5  ;;  %v702_v47 = vsel %vm701_vm15, %v700_v54, %v698_v46 }
 0x265   : > { %v1024_v45 = vsel %vm701_vm15, %v1023_v8, %v1022_v51  ;;  %v706_v35 = vsel %vm705_vm0, %v704_v44, %v702_v47 }
 0x266   : > { %707 = vst [vmem:[%s137_s4] sm:$0x1] %v706_v35  ;;  %v1026_v40 = vsel %vm705_vm0, %v1025_v36, %v1024_v45 }
 0x267   : > { %1027 = vst [vmem:[%s137_s4 + $0x1] sm:$0x1] %v1026_v40 }
 0x268   : > { %1224 = shalt.err (!%p1221_p3)
}
 0x269   : > { %1158 = dma.vmem_to_hbm [thread:$0]  (%p1314_p5), %s1042_s5, 32, %s1044_s6, %s1029_s7  }
 0x26a PF: > { %p1164_p4 = scmp.ge.s32.totalorder %s1259_s12, 2  ;;  %s1055_s24 = sand.u32 1, %s1247_s9  }
 0x26b   : > { %s1056_s25 = scalar_lea.sflag [#allocation3], %s1055_s24 }
 0x26c   : > { %p1161_p7 = pnand %p1164_p4, %p1318_p6 }
 0x26e   : > { %p1162_p8 = pneg %p1161_p7 }
 0x270   : > { %1242 = dma.done.wait (%p1162_p8), %s1056_s25, 32  }
 0x271   : > { %1244 = vsyncadd (%p1162_p8), %s1056_s25, 4294967264  ;;  %p12_p9 = scmp.ge.s32.totalorder %s1301_s15, 4   ;;  %s2204_s9 = smov %s1251_s10 }
 0x272   : > { %s2205_s10 = smov %s1255_s11  ;;  %s2206_s11 = smov %s1312_s18 }
 0x273   : > { %s2207_s12 = smov %s1301_s15  ;;  %14 = sbr.rel (!%p12_p9) target bundleno = 3 (0x3), region = 63 }
 0x278   :  { %1062 = vsyncpa [#allocation3], 1 }
 0x279   :  { %1064 = vsyncpa [#allocation3 + $0x1], 1 }

</bundles_post_ra>
